<compile_context>
chip_gen: v5e
topology: v5e:2x2
jax: 0.10.0
libtpu: 0.0.40
codegen_flags: <defaults>
</compile_context>

<pallas_src>
import jax
import jax.numpy as jnp
from jax.experimental import pallas as pl
from jax.experimental.pallas import tpu as pltpu

_LANE = 128
_SUBLANE = 8


def _pad_to(n, m):
    return ((n + m - 1) // m) * m


def _leaky_relu(h, slope=0.2):
    return jnp.where(h > 0, h, slope * h)


def generator_kernel(x_ref,
                     w1_ref, b1_ref,
                     w2_ref, b2_ref,
                     w3_ref, b3_ref,
                     w4_ref, b4_ref,
                     o_ref):
    # Activations stay f32 between layers; matmul inputs are bf16 (MXU-native),
    # accumulation is f32 via preferred_element_type. Biases are f32.
    h = x_ref[...]

    def layer(h, w_ref, b_ref):
        h = jnp.dot(h.astype(jnp.bfloat16), w_ref[...],
                    preferred_element_type=jnp.float32) + b_ref[...]
        return _leaky_relu(h)

    h = layer(h, w1_ref, b1_ref)   # fc1 -> leaky_relu   (dropout = identity, eval)
    h = layer(h, w2_ref, b2_ref)   # fc2 -> leaky_relu
    h = layer(h, w3_ref, b3_ref)   # fc3 -> leaky_relu
    h = layer(h, w4_ref, b4_ref)   # fc4 -> leaky_relu
    o_ref[...] = jnp.tanh(h).astype(o_ref.dtype)   # tanh output


def generator_forward(x, params, output_size, *, batch_tile=None):
    """x: (B, input_size) float32. params: padded bf16 weights / f32 biases."""
    B, in_dim = x.shape
    in_pad = params["w1"].shape[0]
    out_pad = params["w4"].shape[1]

    # Pad input features to the 128-lane multiple the weights were padded to.
    if in_dim < in_pad:
        x = jnp.pad(x, ((0, 0), (0, in_pad - in_dim)))

    # Choose a batch tile: multiple of 8 sublanes, capped so double-buffered
    # (tb, 896) f32 output tiles stay well inside v7x's smaller VMEM, and
    # split into >=2 "parallel" grid steps when B permits (v7x megacore).
    B8 = _pad_to(B, _SUBLANE)
    if batch_tile is None:
        tb = min(256, B8)
        if B8 >= 2 * _SUBLANE and tb == B8:
            tb = B8 // 2
    else:
        tb = batch_tile
    tb = max(_SUBLANE, (tb // _SUBLANE) * _SUBLANE)

    B_pad = _pad_to(B, tb)
    if B_pad > B:
        x = jnp.pad(x, ((0, B_pad - B), (0, 0)))

    grid = (B_pad // tb,)

    def full(arr):
        # Weights/biases replicated (VMEM-resident) across every grid step.
        return pl.BlockSpec(arr.shape, lambda i: (0, 0))

    in_specs = [
        pl.BlockSpec((tb, in_pad), lambda i: (i, 0)),
        full(params["w1"]), full(params["b1"]),
        full(params["w2"]), full(params["b2"]),
        full(params["w3"]), full(params["b3"]),
        full(params["w4"]), full(params["b4"]),
    ]
    out_spec = pl.BlockSpec((tb, out_pad), lambda i: (i, 0))

    out = pl.pallas_call(
        generator_kernel,
        out_shape=jax.ShapeDtypeStruct((B_pad, out_pad), jnp.float32),
        grid_spec=pltpu.PrefetchScalarGridSpec(
            num_scalar_prefetch=0,
            grid=grid,
            in_specs=in_specs,
            out_specs=out_spec,
        ),
        compiler_params=pltpu.CompilerParams(
            dimension_semantics=("parallel",)),
    )(x,
      params["w1"], params["b1"],
      params["w2"], params["b2"],
      params["w3"], params["b3"],
      params["w4"], params["b4"])

    return out[:B, :output_size]


def init_params(key, input_size, output_size=784):
    """PyTorch-style init U(-1/sqrt(fan_in), 1/sqrt(fan_in)).
    Weights stored pre-transposed (in, out), zero-padded to 128-multiples,
    cast to bf16. Biases kept f32, shaped (1, out_pad)."""
    dims = [input_size, 32, 64, 128, output_size]
    pdims = [_pad_to(d, _LANE) for d in dims]
    params = {}
    for idx in range(4):
        fin, fout = dims[idx], dims[idx + 1]
        pfin, pfout = pdims[idx], pdims[idx + 1]
        key, kw, kb = jax.random.split(key, 3)
        bound = 1.0 / float(fin) ** 0.5
        w = jax.random.uniform(kw, (fin, fout), jnp.float32, -bound, bound)
        b = jax.random.uniform(kb, (fout,), jnp.float32, -bound, bound)
        wp = jnp.zeros((pfin, pfout), jnp.float32).at[:fin, :fout].set(w)
        bp = jnp.zeros((1, pfout), jnp.float32).at[0, :fout].set(b)
        params[f"w{idx + 1}"] = wp.astype(jnp.bfloat16)
        params[f"b{idx + 1}"] = bp
    return params


def reference_forward_bf16(x, params, output_size):
    """Bit-matching reference: bf16 matmul inputs, f32 accumulation."""
    in_pad = params["w1"].shape[0]
    h = jnp.pad(x, ((0, 0), (0, in_pad - x.shape[1])))
    for idx in range(1, 5):
        h = jnp.dot(h.astype(jnp.bfloat16), params[f"w{idx}"],
                    preferred_element_type=jnp.float32) + params[f"b{idx}"]
        h = jnp.where(h > 0, h, 0.2 * h)
    return jnp.tanh(h)[:, :output_size]


def reference_forward_f32(x, params, output_size):
    """Pure-f32 reference of the module semantics (weights dequantized)."""
    in_pad = params["w1"].shape[0]
    h = jnp.pad(x, ((0, 0), (0, in_pad - x.shape[1])))
    for idx in range(1, 5):
        h = h @ params[f"w{idx}"].astype(jnp.float32) + params[f"b{idx}"]
        h = jnp.where(h > 0, h, 0.2 * h)
    return jnp.tanh(h)[:, :output_size]


if __name__ == "__main__":
    key = jax.random.PRNGKey(0)
    k_x, k_p = jax.random.split(key)

    batch = 8
    input_size = 16
    output_size = 784

    x = jax.random.normal(k_x, (batch, input_size), jnp.float32)
    params = init_params(k_p, input_size, output_size)

    out = generator_forward(x, params, output_size)
    out = jax.block_until_ready(out)
    assert out.shape == (batch, output_size), out.shape

    # Tight check against a reference with identical numerics (bf16 inputs,
    # f32 accumulate) — validates tiling/padding/fusion correctness.
    ref_bf16 = reference_forward_bf16(x, params, output_size)
    assert jnp.allclose(out, ref_bf16, atol=2e-3, rtol=2e-3), \
        float(jnp.max(jnp.abs(out - ref_bf16)))

    # Looser check against pure-f32 math — validates module semantics
    # despite the bf16 weight/activation quantization.
    ref_f32 = reference_forward_f32(x, params, output_size)
    assert jnp.allclose(out, ref_f32, atol=5e-2, rtol=5e-2), \
        float(jnp.max(jnp.abs(out - ref_f32)))

    print("KERNEL_OK")
</pallas_src>

<mosaic_0001>
module attributes {stable_mosaic.version = 11 : i64} {
  func.func @generator_kernel(%arg0: i32, %arg1: memref<8x128xf32, #tpu.memory_space<vmem>>, %arg2: memref<128x128xbf16, #tpu.memory_space<vmem>>, %arg3: memref<1x128xf32, #tpu.memory_space<vmem>>, %arg4: memref<128x128xbf16, #tpu.memory_space<vmem>>, %arg5: memref<1x128xf32, #tpu.memory_space<vmem>>, %arg6: memref<128x128xbf16, #tpu.memory_space<vmem>>, %arg7: memref<1x128xf32, #tpu.memory_space<vmem>>, %arg8: memref<128x896xbf16, #tpu.memory_space<vmem>>, %arg9: memref<1x896xf32, #tpu.memory_space<vmem>>, %arg10: memref<8x896xf32, #tpu.memory_space<vmem>>) attributes {dimension_semantics = [#tpu.dimension_semantics<parallel>], iteration_bounds = array<i64: 1>, scalar_prefetch = 0 : i64, scratch_operands = 0 : i64, tpu.core_type = #tpu.core_type<tc>, window_params = [{transform_indices = @transform_0, window_bounds = array<i64: 8, 128>}, {pipeline_mode = #tpu.pipeline_mode<synchronous>, transform_indices = @transform_1, window_bounds = array<i64: 128, 128>}, {pipeline_mode = #tpu.pipeline_mode<synchronous>, transform_indices = @transform_2, window_bounds = array<i64: 1, 128>}, {pipeline_mode = #tpu.pipeline_mode<synchronous>, transform_indices = @transform_3, window_bounds = array<i64: 128, 128>}, {pipeline_mode = #tpu.pipeline_mode<synchronous>, transform_indices = @transform_4, window_bounds = array<i64: 1, 128>}, {pipeline_mode = #tpu.pipeline_mode<synchronous>, transform_indices = @transform_5, window_bounds = array<i64: 128, 128>}, {pipeline_mode = #tpu.pipeline_mode<synchronous>, transform_indices = @transform_6, window_bounds = array<i64: 1, 128>}, {pipeline_mode = #tpu.pipeline_mode<synchronous>, transform_indices = @transform_7, window_bounds = array<i64: 128, 896>}, {pipeline_mode = #tpu.pipeline_mode<synchronous>, transform_indices = @transform_8, window_bounds = array<i64: 1, 896>}, {transform_indices = @transform_9, window_bounds = array<i64: 8, 896>}]} {
    %c0 = arith.constant 0 : index
    %c0_0 = arith.constant 0 : index
    %0 = vector.load %arg1[%c0, %c0_0] : memref<8x128xf32, #tpu.memory_space<vmem>>, vector<8x128xf32>
    %1 = arith.truncf %0 : vector<8x128xf32> to vector<8x128xbf16>
    %c0_1 = arith.constant 0 : index
    %c0_2 = arith.constant 0 : index
    %2 = vector.load %arg2[%c0_1, %c0_2] : memref<128x128xbf16, #tpu.memory_space<vmem>>, vector<128x128xbf16>
    %cst = arith.constant dense<0.000000e+00> : vector<8x128xf32>
    %3 = tpu.matmul %1, %2, %cst {dimension_numbers = #tpu.dot_dimension_numbers<[1], [0], [0], [1], [0, 0, 1, 1], [], []>} : vector<8x128xbf16>, vector<128x128xbf16>, vector<8x128xf32> -> vector<8x128xf32>
    %c0_3 = arith.constant 0 : index
    %c0_4 = arith.constant 0 : index
    %4 = vector.load %arg3[%c0_3, %c0_4] : memref<1x128xf32, #tpu.memory_space<vmem>>, vector<1x128xf32>
    %5 = vector.broadcast %4 : vector<1x128xf32> to vector<8x128xf32>
    %6 = arith.addf %3, %5 : vector<8x128xf32>
    %cst_5 = arith.constant 0.000000e+00 : f32
    %7 = vector.broadcast %cst_5 : f32 to vector<8x128xf32>
    %8 = arith.cmpf ogt, %6, %7 : vector<8x128xf32>
    %cst_6 = arith.constant 2.000000e-01 : f32
    %9 = vector.broadcast %cst_6 : f32 to vector<8x128xf32>
    %10 = arith.mulf %9, %6 : vector<8x128xf32>
    %11 = arith.select %8, %6, %10 : vector<8x128xi1>, vector<8x128xf32>
    %12 = arith.truncf %11 : vector<8x128xf32> to vector<8x128xbf16>
    %c0_7 = arith.constant 0 : index
    %c0_8 = arith.constant 0 : index
    %13 = vector.load %arg4[%c0_7, %c0_8] : memref<128x128xbf16, #tpu.memory_space<vmem>>, vector<128x128xbf16>
    %cst_9 = arith.constant dense<0.000000e+00> : vector<8x128xf32>
    %14 = tpu.matmul %12, %13, %cst_9 {dimension_numbers = #tpu.dot_dimension_numbers<[1], [0], [0], [1], [0, 0, 1, 1], [], []>} : vector<8x128xbf16>, vector<128x128xbf16>, vector<8x128xf32> -> vector<8x128xf32>
    %c0_10 = arith.constant 0 : index
    %c0_11 = arith.constant 0 : index
    %15 = vector.load %arg5[%c0_10, %c0_11] : memref<1x128xf32, #tpu.memory_space<vmem>>, vector<1x128xf32>
    %16 = vector.broadcast %15 : vector<1x128xf32> to vector<8x128xf32>
    %17 = arith.addf %14, %16 : vector<8x128xf32>
    %cst_12 = arith.constant 0.000000e+00 : f32
    %18 = vector.broadcast %cst_12 : f32 to vector<8x128xf32>
    %19 = arith.cmpf ogt, %17, %18 : vector<8x128xf32>
    %cst_13 = arith.constant 2.000000e-01 : f32
    %20 = vector.broadcast %cst_13 : f32 to vector<8x128xf32>
    %21 = arith.mulf %20, %17 : vector<8x128xf32>
    %22 = arith.select %19, %17, %21 : vector<8x128xi1>, vector<8x128xf32>
    %23 = arith.truncf %22 : vector<8x128xf32> to vector<8x128xbf16>
    %c0_14 = arith.constant 0 : index
    %c0_15 = arith.constant 0 : index
    %24 = vector.load %arg6[%c0_14, %c0_15] : memref<128x128xbf16, #tpu.memory_space<vmem>>, vector<128x128xbf16>
    %cst_16 = arith.constant dense<0.000000e+00> : vector<8x128xf32>
    %25 = tpu.matmul %23, %24, %cst_16 {dimension_numbers = #tpu.dot_dimension_numbers<[1], [0], [0], [1], [0, 0, 1, 1], [], []>} : vector<8x128xbf16>, vector<128x128xbf16>, vector<8x128xf32> -> vector<8x128xf32>
    %c0_17 = arith.constant 0 : index
    %c0_18 = arith.constant 0 : index
    %26 = vector.load %arg7[%c0_17, %c0_18] : memref<1x128xf32, #tpu.memory_space<vmem>>, vector<1x128xf32>
    %27 = vector.broadcast %26 : vector<1x128xf32> to vector<8x128xf32>
    %28 = arith.addf %25, %27 : vector<8x128xf32>
    %cst_19 = arith.constant 0.000000e+00 : f32
    %29 = vector.broadcast %cst_19 : f32 to vector<8x128xf32>
    %30 = arith.cmpf ogt, %28, %29 : vector<8x128xf32>
    %cst_20 = arith.constant 2.000000e-01 : f32
    %31 = vector.broadcast %cst_20 : f32 to vector<8x128xf32>
    %32 = arith.mulf %31, %28 : vector<8x128xf32>
    %33 = arith.select %30, %28, %32 : vector<8x128xi1>, vector<8x128xf32>
    %34 = arith.truncf %33 : vector<8x128xf32> to vector<8x128xbf16>
    %c0_21 = arith.constant 0 : index
    %c0_22 = arith.constant 0 : index
    %35 = vector.load %arg8[%c0_21, %c0_22] : memref<128x896xbf16, #tpu.memory_space<vmem>>, vector<128x896xbf16>
    %cst_23 = arith.constant dense<0.000000e+00> : vector<8x896xf32>
    %36 = tpu.matmul %34, %35, %cst_23 {dimension_numbers = #tpu.dot_dimension_numbers<[1], [0], [0], [1], [0, 0, 1, 1], [], []>} : vector<8x128xbf16>, vector<128x896xbf16>, vector<8x896xf32> -> vector<8x896xf32>
    %c0_24 = arith.constant 0 : index
    %c0_25 = arith.constant 0 : index
    %37 = vector.load %arg9[%c0_24, %c0_25] : memref<1x896xf32, #tpu.memory_space<vmem>>, vector<1x896xf32>
    %38 = vector.broadcast %37 : vector<1x896xf32> to vector<8x896xf32>
    %39 = arith.addf %36, %38 : vector<8x896xf32>
    %cst_26 = arith.constant 0.000000e+00 : f32
    %40 = vector.broadcast %cst_26 : f32 to vector<8x896xf32>
    %41 = arith.cmpf ogt, %39, %40 : vector<8x896xf32>
    %cst_27 = arith.constant 2.000000e-01 : f32
    %42 = vector.broadcast %cst_27 : f32 to vector<8x896xf32>
    %43 = arith.mulf %42, %39 : vector<8x896xf32>
    %44 = arith.select %41, %39, %43 : vector<8x896xi1>, vector<8x896xf32>
    %45 = math.tanh %44 : vector<8x896xf32>
    %c0_28 = arith.constant 0 : index
    %c0_29 = arith.constant 0 : index
    %46 = vector.load %arg10[%c0_28, %c0_29] : memref<8x896xf32, #tpu.memory_space<vmem>>, vector<8x896xf32>
    tpu.vector_store %arg10[%c0_28, %c0_29], %45 {strides = array<i32>} : memref<8x896xf32, #tpu.memory_space<vmem>>, vector<8x896xf32>,
    return
  }
  func.func @transform_0(%arg0: i32) -> (i32, i32) {
    %c0_i32 = arith.constant 0 : i32
    %c0_i32_0 = arith.constant 0 : i32
    return %arg0, %c0_i32 : i32, i32
  }
  func.func @transform_1(%arg0: i32) -> (i32, i32) {
    %c0_i32 = arith.constant 0 : i32
    %c0_i32_0 = arith.constant 0 : i32
    %c0_i32_1 = arith.constant 0 : i32
    return %c0_i32, %c0_i32_0 : i32, i32
  }
  func.func @transform_2(%arg0: i32) -> (i32, i32) {
    %c0_i32 = arith.constant 0 : i32
    %c0_i32_0 = arith.constant 0 : i32
    %c0_i32_1 = arith.constant 0 : i32
    return %c0_i32, %c0_i32_0 : i32, i32
  }
  func.func @transform_3(%arg0: i32) -> (i32, i32) {
    %c0_i32 = arith.constant 0 : i32
    %c0_i32_0 = arith.constant 0 : i32
    %c0_i32_1 = arith.constant 0 : i32
    return %c0_i32, %c0_i32_0 : i32, i32
  }
  func.func @transform_4(%arg0: i32) -> (i32, i32) {
    %c0_i32 = arith.constant 0 : i32
    %c0_i32_0 = arith.constant 0 : i32
    %c0_i32_1 = arith.constant 0 : i32
    return %c0_i32, %c0_i32_0 : i32, i32
  }
  func.func @transform_5(%arg0: i32) -> (i32, i32) {
    %c0_i32 = arith.constant 0 : i32
    %c0_i32_0 = arith.constant 0 : i32
    %c0_i32_1 = arith.constant 0 : i32
    return %c0_i32, %c0_i32_0 : i32, i32
  }
  func.func @transform_6(%arg0: i32) -> (i32, i32) {
    %c0_i32 = arith.constant 0 : i32
    %c0_i32_0 = arith.constant 0 : i32
    %c0_i32_1 = arith.constant 0 : i32
    return %c0_i32, %c0_i32_0 : i32, i32
  }
  func.func @transform_7(%arg0: i32) -> (i32, i32) {
    %c0_i32 = arith.constant 0 : i32
    %c0_i32_0 = arith.constant 0 : i32
    %c0_i32_1 = arith.constant 0 : i32
    return %c0_i32, %c0_i32_0 : i32, i32
  }
  func.func @transform_8(%arg0: i32) -> (i32, i32) {
    %c0_i32 = arith.constant 0 : i32
    %c0_i32_0 = arith.constant 0 : i32
    %c0_i32_1 = arith.constant 0 : i32
    return %c0_i32, %c0_i32_0 : i32, i32
  }
  func.func @transform_9(%arg0: i32) -> (i32, i32) {
    %c0_i32 = arith.constant 0 : i32
    %c0_i32_0 = arith.constant 0 : i32
    return %arg0, %c0_i32 : i32, i32
  }
}

</mosaic_0001>

<bundles_post_ra>
// kernel: tpu_custom_call.1
= control target key start
LH: loop header
LB: loop body
LE: loop exit
PB: predicated region body
PF: predicated region fallthrough
CT: control target
= control target key end

     0   :  { %14 = vsyncpa [#allocation3], 0  ;;  %s1673_s0 = inlined_call_operand.hbm [shape: f32[8,128], index: 0, kind: input, shape index: {}]   ;;  %s1674_s1 = inlined_call_operand.hbm [shape: bf16[128,128], index: 1, kind: input, shape index: {}]   ;;  %s1675_s2 = inlined_call_operand.hbm [shape: f32[1,128], index: 2, kind: input, shape index: {}]   ;;  %s1676_s3 = inlined_call_operand.hbm [shape: bf16[128,128], index: 3, kind: input, shape index: {}]   ;;  %s1677_s4 = inlined_call_operand.hbm [shape: f32[1,128], index: 4, kind: input, shape index: {}]   ;;  %s1678_s5 = inlined_call_operand.hbm [shape: bf16[128,128], index: 5, kind: input, shape index: {}]   ;;  %s1679_s6 = inlined_call_operand.hbm [shape: f32[1,128], index: 6, kind: input, shape index: {}]   ;;  %s1680_s7 = inlined_call_operand.hbm [shape: bf16[128,896], index: 7, kind: input, shape index: {}]   ;;  %s1681_s8 = inlined_call_operand.vmem [shape: f32[1,896], index: 8, kind: input, shape index: {}]   ;;  %s1682_s9 = inlined_call_operand.hbm [shape: f32[8,896], index: 9, kind: output, shape index: {}]  }
   0x1   :  { %15 = vsyncpa [#allocation6], 0 }
   0x2   :  { %16 = vsyncpa [#allocation9], 0 }
   0x3   :  { %17 = vsyncpa [#allocation12], 0 }
   0x4   :  { %18 = vsyncpa [#allocation15], 0  ;;  %s35_s11 = sshll.u32 %s1674_s1, 4  ;;  %s36_s11 = int_to_ptr.hbm [resolvable:$true] %s35_s11 }
   0x5   :  { %19 = vsyncpa [#allocation4], 0  ;;  %s1580_s12 = smov [#allocation5]   ;;  %s59_s16 = sshll.u32 %s1676_s3, 4  ;;  %s60_s16 = int_to_ptr.hbm [resolvable:$true] %s59_s16 }
   0x6   :  { %s37_s13 = sshll.u32 %s1580_s12, 4  ;;  %s1581_s17 = smov 64   ;;  %s38_s13 = int_to_ptr.vmem [resolvable:$true] %s37_s13 }
   0x7   :  { %s1582_s18 = smov 4   ;;  %s1583_s19 = smov [#allocation8]  }
   0x8   :  { %43 = dma.hbm_to_vmem [thread:$0]  %s36_s11, 1024, %s38_s13, [#allocation6], %s1581_s17, %s1581_s17, %s1582_s18  }
   0x9   :  { %s61_s20 = sshll.u32 %s1583_s19, 4  ;;  %s83_s23 = sshll.u32 %s1678_s5, 4  ;;  %s62_s20 = int_to_ptr.vmem [resolvable:$true] %s61_s20  ;;  %s84_s23 = int_to_ptr.hbm [resolvable:$true] %s83_s23 }
   0xa   :  { %67 = dma.hbm_to_vmem [thread:$0]  %s60_s16, 1024, %s62_s20, [#allocation9], %s1581_s17, %s1581_s17, %s1582_s18  }
   0xb   :  { %s25_s25 = sshll.u32 %s1673_s0, 4  ;;  %s1584_s26 = smov [#allocation11]   ;;  %s26_s25 = int_to_ptr.hbm [resolvable:$true] %s25_s25 }
   0xc   :  { %s85_s27 = sshll.u32 %s1584_s26, 4  ;;  %s1585_s3 = smov [#allocation2]   ;;  %s86_s27 = int_to_ptr.vmem [resolvable:$true] %s85_s27 }
   0xd   :  { %91 = dma.hbm_to_vmem [thread:$0]  %s84_s23, 1024, %s86_s27, [#allocation12], %s1581_s17, %s1581_s17, %s1582_s18  }
   0xe   :  { %s27_s28 = sshll.u32 %s1585_s3, 4  ;;  %s49_s10 = sshll.u32 %s1675_s2, 4  ;;  %s28_s28 = int_to_ptr.vmem [resolvable:$true] %s27_s28  ;;  %s50_s10 = int_to_ptr.hbm [resolvable:$true] %s49_s10 }
   0xf   :  { %30 = dma.hbm_to_vmem [thread:$0]  %s26_s25, 128, %s28_s28, [#allocation3]  }
  0x10   :  { %s73_s12 = sshll.u32 %s1677_s4, 4  ;;  %s1586_s13 = smov [#allocation7]   ;;  %s74_s12 = int_to_ptr.hbm [resolvable:$true] %s73_s12 }
  0x11   :  { %s51_s0 = sshll.u32 %s1586_s13, 4  ;;  %s1587_s14 = smov [#allocation10]   ;;  %s52_s0 = int_to_ptr.vmem [resolvable:$true] %s51_s0 }
  0x12   :  { %54 = dma.hbm_to_vmem [thread:$0]  %s50_s10, 16, %s52_s0, [#allocation6]  }
  0x13   :  { %s75_s15 = sshll.u32 %s1587_s14, 4  ;;  %s97_s18 = sshll.u32 %s1679_s6, 4  ;;  %s76_s15 = int_to_ptr.vmem [resolvable:$true] %s75_s15  ;;  %s98_s18 = int_to_ptr.hbm [resolvable:$true] %s97_s18 }
  0x14   :  { %78 = dma.hbm_to_vmem [thread:$0]  %s74_s12, 16, %s76_s15, [#allocation9]  }
  0x15   :  { %s107_s20 = sshll.u32 %s1680_s7, 4  ;;  %s1588_s21 = smov [#allocation13]   ;;  %s108_s20 = int_to_ptr.hbm [resolvable:$true] %s107_s20 }
  0x16   :  { %s99_s4 = sshll.u32 %s1588_s21, 4  ;;  %s1589_s22 = smov [#allocation14]   ;;  %s100_s4 = int_to_ptr.vmem [resolvable:$true] %s99_s4 }
  0x17   :  { %102 = dma.hbm_to_vmem [thread:$0]  %s98_s18, 16, %s100_s4, [#allocation12]  }
  0x18   :  { %s109_s23 = sshll.u32 %s1589_s22, 4  ;;  %s1590_s1 = smov 448   ;;  %s110_s23 = int_to_ptr.vmem [resolvable:$true] %s109_s23 }
  0x19   :  { %s1591_s24 = smov 28  }
  0x1a   :  { %115 = dma.hbm_to_vmem [thread:$0]  %s108_s20, 7168, %s110_s23, [#allocation15], %s1590_s1, %s1590_s1, %s1591_s24  }
  0x1b   :  { %1568 = dma.done.wait [#allocation3], 128  }
  0x1c   :  { %1569 = vsyncadd [#allocation3], 4294967168 }
  0x1d   :  { %1570 = dma.done.wait [#allocation6], 1040  }
  0x1e   :  { %1571 = vsyncadd [#allocation6], 4294966256 }
  0x1f   :  { %1572 = dma.done.wait [#allocation9], 1040  }
  0x20   :  { %1573 = vsyncadd [#allocation9], 4294966256 }
  0x21   :  { %1574 = dma.done.wait [#allocation12], 1040  }
  0x22   :  { %1575 = vsyncadd [#allocation12], 4294966256 }
  0x23   :  { %1576 = dma.done.wait [#allocation15], 7168  }
  0x24   :  { %1577 = vsyncadd [#allocation15], 4294960128  ;;  %v1249_v0 = vld [vmem:[#allocation5 + $0x38] sm:$0xff]  ;;  %v1248_v1 = vld [vmem:[#allocation5 + $0x30] sm:$0xff]  ;;  %s908_s3 = sshll.u32 %s1682_s9, 4  ;;  %s909_s3 = int_to_ptr.hbm [resolvable:$true] %s908_s3 }
  0x25   :  { %220 = vmatpush.bf16.msra.mxu0 %v1249_v0  ;;  %v1257_v2 = vld [vmem:[#allocation8 + $0x38] sm:$0xff]  ;;  %v1256_v3 = vld [vmem:[#allocation8 + $0x30] sm:$0xff]  ;;  %v1247_v4 = vld [vmem:[#allocation5 + $0x28] sm:$0xff] }
  0x26   :  { %305 = vmatpush.bf16.msra.mxu1 %v1257_v2  ;;  %v1255_v5 = vld [vmem:[#allocation8 + $0x28] sm:$0xff]  ;;  %v1246_v6 = vld [vmem:[#allocation5 + $0x20] sm:$0xff]  ;;  %v1245_v8 = vld [vmem:[#allocation5 + $0x18] sm:$0xff] }
  0x27   :  { %v1254_v7 = vld [vmem:[#allocation8 + $0x20] sm:$0xff]  ;;  %v1253_v9 = vld [vmem:[#allocation8 + $0x18] sm:$0xff]  ;;  %v1244_v10 = vld [vmem:[#allocation5 + $0x10] sm:$0xff] }
  0x28   :  { %v1252_v11 = vld [vmem:[#allocation8 + $0x10] sm:$0xff]  ;;  %v1243_v12 = vld [vmem:[#allocation5 + $0x8] sm:$0xff]  ;;  %v1242_v13 = vld [vmem:[#allocation5] sm:$0xff] }
  0x29   :  { %221 = vmatpush.bf16.msra.mxu0 %v1248_v1  ;;  %v150_v14 = vld [vmem:[#allocation2] sm:$0xff]  ;;  %v1251_v16 = vld [vmem:[#allocation8 + $0x8] sm:$0xff]  ;;  %v1250_v17 = vld [vmem:[#allocation8] sm:$0xff] }
  0x2a   :  { %306 = vmatpush.bf16.msra.mxu1 %v1256_v3  ;;  %v151_v15 = vpack.c.bf16 %v150_v14, %v150_v14  ;;  %v1265_v18 = vld [vmem:[#allocation11 + $0x38] sm:$0xff]  ;;  %v1264_v19 = vld [vmem:[#allocation11 + $0x30] sm:$0xff]  ;;  %v1263_v20 = vld [vmem:[#allocation11 + $0x28] sm:$0xff] }
  0x2b   :  { %390 = vmatpush.bf16.msra.mxu2 %v1265_v18  ;;  %v1262_v21 = vld [vmem:[#allocation11 + $0x20] sm:$0xff]  ;;  %v1261_v22 = vld [vmem:[#allocation11 + $0x18] sm:$0xff]  ;;  %v1260_v23 = vld [vmem:[#allocation11 + $0x10] sm:$0xff] }
  0x2c   :  { %v1335_v24 = vld [vmem:[#allocation7] ss:$0 sm:$0xff]  ;;  %v1259_v31 = vld [vmem:[#allocation11 + $0x8] sm:$0xff]  ;;  %v1258_v32 = vld [vmem:[#allocation11] sm:$0xff] }
  0x2d   :  { %222 = vmatpush.bf16.msra.mxu0 %v1247_v4  ;;  %v1216_v33 = vld [vmem:[#allocation14 + $0x188] sm:$0xf]  ;;  %v1318_v34 = vld [vmem:[#allocation14 + $0x1a0] sm:$0xf0]  ;;  %v1315_v35 = vld [vmem:[#allocation14 + $0x18c] sm:$0xf] }
  0x2e   :  { %307 = vmatpush.bf16.msra.mxu1 %v1255_v5  ;;  %v1217_v36 = vor.u32 %v1318_v34, %v1216_v33  ;;  %v1218_v37 = vld [vmem:[#allocation14 + $0x1a4] sm:$0xf0]  ;;  %v1224_v38 = vld [vmem:[#allocation14 + $0x190] sm:$0xf]  ;;  %v1319_v39 = vld [vmem:[#allocation14 + $0x1a8] sm:$0xf0] }
  0x2f   :  { %391 = vmatpush.bf16.msra.mxu2 %v1264_v19  ;;  %v1221_v40 = vor.u32 %v1315_v35, %v1218_v37  ;;  %v1225_v41 = vor.u32 %v1319_v39, %v1224_v38  ;;  %v1188_v42 = vld [vmem:[#allocation14 + $0x150] sm:$0xf]  ;;  %v1311_v43 = vld [vmem:[#allocation14 + $0x168] sm:$0xf0]  ;;  %v1308_v44 = vld [vmem:[#allocation14 + $0x154] sm:$0xf] }
  0x30   :  { %775 = vmatpush.bf16.msra.mxu3 %v1217_v36  ;;  %v1189_v45 = vor.u32 %v1311_v43, %v1188_v42  ;;  %v1190_v46 = vld [vmem:[#allocation14 + $0x16c] sm:$0xf0]  ;;  %v1196_v47 = vld [vmem:[#allocation14 + $0x158] sm:$0xf]  ;;  %v1312_v48 = vld [vmem:[#allocation14 + $0x170] sm:$0xf0] }
  0x31   :  { %223 = vmatpush.bf16.msra.mxu0 %v1246_v6  ;;  %v1193_v49 = vor.u32 %v1308_v44, %v1190_v46  ;;  %v1197_v50 = vor.u32 %v1312_v48, %v1196_v47  ;;  %v1160_v51 = vld [vmem:[#allocation14 + $0x118] sm:$0xf]  ;;  %v1304_v52 = vld [vmem:[#allocation14 + $0x130] sm:$0xf0]  ;;  %v1301_v53 = vld [vmem:[#allocation14 + $0x11c] sm:$0xf] }
  0x32   :  { %308 = vmatpush.bf16.msra.mxu1 %v1254_v7  ;;  %v1162_v54 = vld [vmem:[#allocation14 + $0x134] sm:$0xf0]  ;;  %v1168_v55 = vld [vmem:[#allocation14 + $0x120] sm:$0xf]  ;;  %v1305_v56 = vld [vmem:[#allocation14 + $0x138] sm:$0xf0]  ;;  %v1161_v57 = vor.u32 %v1304_v52, %v1160_v51 }
  0x33   :  { %392 = vmatpush.bf16.msra.mxu2 %v1263_v20  ;;  %v1132_v58 = vld [vmem:[#allocation14 + $0xe0] sm:$0xf]  ;;  %v1297_v59 = vld [vmem:[#allocation14 + $0xf8] sm:$0xf0]  ;;  %v1165_v60 = vor.u32 %v1301_v53, %v1162_v54  ;;  %v1169_v61 = vor.u32 %v1305_v56, %v1168_v55  ;;  %v1294_v62 = vld [vmem:[#allocation14 + $0xe4] sm:$0xf] }
  0x34   :  { %776 = vmatpush.bf16.msra.mxu3 %v1189_v45  ;;  %v1316_v63 = vld [vmem:[#allocation14 + $0x194] sm:$0xf]  ;;  %v1226_v0 = vld [vmem:[#allocation14 + $0x1ac] sm:$0xf0]  ;;  %v1134_v1 = vld [vmem:[#allocation14 + $0xfc] sm:$0xf0]  ;;  %v1133_v6 = vor.u32 %v1297_v59, %v1132_v58 }
  0x35   :  { %224 = vmatpush.bf16.msra.mxu0 %v1245_v8  ;;  %v1140_v2 = vld [vmem:[#allocation14 + $0xe8] sm:$0xf]  ;;  %v1298_v3 = vld [vmem:[#allocation14 + $0x100] sm:$0xf0]  ;;  %v1229_v4 = vor.u32 %v1316_v63, %v1226_v0  ;;  %v1309_v5 = vld [vmem:[#allocation14 + $0x15c] sm:$0xf] }
  0x36   :  { %309 = vmatpush.bf16.msra.mxu1 %v1253_v9  ;;  %v1104_v7 = vld [vmem:[#allocation14 + $0xa8] sm:$0xf]  ;;  %v1290_v8 = vld [vmem:[#allocation14 + $0xc0] sm:$0xf0]  ;;  %v1198_v9 = vld [vmem:[#allocation14 + $0x174] sm:$0xf0] }
  0x37   :  { %393 = vmatpush.bf16.msra.mxu2 %v1262_v21  ;;  %v1112_v14 = vld [vmem:[#allocation14 + $0xb0] sm:$0xf]  ;;  %v1170_v18 = vld [vmem:[#allocation14 + $0x13c] sm:$0xf0]  ;;  %v1105_v19 = vor.u32 %v1290_v8, %v1104_v7  ;;  %v1283_v21 = vld [vmem:[#allocation14 + $0x88] sm:$0xf0] }
  0x38   :  { %777 = vmatpush.bf16.msra.mxu3 %v1161_v57  ;;  %v1076_v20 = vld [vmem:[#allocation14 + $0x70] sm:$0xf]  ;;  %v1048_v33 = vld [vmem:[#allocation14 + $0x38] sm:$0xf]  ;;  %v1276_v34 = vld [vmem:[#allocation14 + $0x50] sm:$0xf0] }
  0x39   :  { %225 = vmatpush.bf16.msra.mxu0 %v1244_v10  ;;  %v1137_v10 = vor.u32 %v1294_v62, %v1134_v1  ;;  %v1273_v38 = vld [vmem:[#allocation14 + $0x3c] sm:$0xf]  ;;  %v1288_v39 = vld [vmem:[#allocation14 + $0xb4] sm:$0xf]  ;;  %v1056_v42 = vld [vmem:[#allocation14 + $0x40] sm:$0xf]  ;;  %v1049_v45 = vor.u32 %v1276_v34, %v1048_v33 }
  0x3a   :  { %310 = vmatpush.bf16.msra.mxu1 %v1252_v11  ;;  %v1141_v11 = vor.u32 %v1298_v3, %v1140_v2  ;;  %v1277_v43 = vld [vmem:[#allocation14 + $0x58] sm:$0xf0]  ;;  %v1020_v44 = vld [vmem:[#allocation14] sm:$0xf]  ;;  %v1266_v47 = vld [vmem:[#allocation14 + $0x4] sm:$0xf] }
  0x3b   :  { %394 = vmatpush.bf16.msra.mxu2 %v1261_v22  ;;  %v1269_v46 = vld [vmem:[#allocation14 + $0x18] sm:$0xf0]  ;;  %v1022_v48 = vld [vmem:[#allocation14 + $0x1c] sm:$0xf0]  ;;  %v1057_v52 = vor.u32 %v1277_v43, %v1056_v42  ;;  %v1028_v53 = vld [vmem:[#allocation14 + $0x8] sm:$0xf] }
  0x3c   :  { %778 = vmatpush.bf16.msra.mxu3 %v1133_v6  ;;  %v1281_v54 = vld [vmem:[#allocation14 + $0x7c] sm:$0xf]  ;;  %v1086_v55 = vld [vmem:[#allocation14 + $0x94] sm:$0xf0]  ;;  %v1270_v57 = vld [vmem:[#allocation14 + $0x20] sm:$0xf0]  ;;  %v1021_v0 = vor.u32 %v1269_v46, %v1020_v44  ;;  %v1025_v3 = vor.u32 %v1266_v47, %v1022_v48 }
  0x3d   :  { %226 = vmatpush.bf16.msra.mxu0 %v1243_v12  ;;  %v1287_v12 = vld [vmem:[#allocation14 + $0xac] sm:$0xf]  ;;  %v1232_v58 = vld [vmem:[#allocation14 + $0x198] sm:$0xf]  ;;  %v1320_v59 = vld [vmem:[#allocation14 + $0x1b0] sm:$0xf0]  ;;  %v1089_v2 = vor.u32 %v1281_v54, %v1086_v55 }
  0x3e   :  { %311 = vmatpush.bf16.msra.mxu1 %v1251_v16  ;;  %v1291_v16 = vld [vmem:[#allocation14 + $0xc8] sm:$0xf0]  ;;  %v1240_v62 = vld [vmem:[#allocation14 + $0x1a0] sm:$0xf]  ;;  %v1321_v1 = vld [vmem:[#allocation14 + $0x1b8] sm:$0xf0]  ;;  %v1233_v6 = vor.u32 %v1320_v59, %v1232_v58 }
  0x3f   :  { %395 = vmatpush.bf16.msra.mxu2 %v1260_v23  ;;  %v1030_v33 = vld [vmem:[#allocation14 + $0x24] sm:$0xf0]  ;;  %v1148_v34 = vld [vmem:[#allocation14 + $0xf0] sm:$0xf]  ;;  %v1300_v42 = vld [vmem:[#allocation14 + $0x110] sm:$0xf0] }
  0x40   :  { %779 = vmatpush.bf16.msra.mxu3 %v1105_v19  ;;  %v1120_v44 = vld [vmem:[#allocation14 + $0xb8] sm:$0xf]  ;;  %v1289_v46 = vld [vmem:[#allocation14 + $0xbc] sm:$0xf]  ;;  %v1282_v55 = vld [vmem:[#allocation14 + $0x84] sm:$0xf] }
  0x41   :  { %227 = vmatpush.bf16.msra.mxu0 %v1242_v13  ;;  %v1106_v13 = vld [vmem:[#allocation14 + $0xc4] sm:$0xf0]  ;;  %v1122_v48 = vld [vmem:[#allocation14 + $0xd4] sm:$0xf0]  ;;  %v1285_v54 = vld [vmem:[#allocation14 + $0x98] sm:$0xf0] }
  0x42   :  { %312 = vmatpush.bf16.msra.mxu1 %v1250_v17  ;;  %v1302_v17 = vld [vmem:[#allocation14 + $0x124] sm:$0xf]  ;;  %v1109_v23 = vor.u32 %v1287_v12, %v1106_v13  ;;  %v1206_v13 = vld [vmem:[#allocation14 + $0x17c] sm:$0xf0]  ;;  %v1100_v58 = vld [vmem:[#allocation14 + $0x88] sm:$0xf] }
  0x43   :  { %396 = vmatpush.bf16.msra.mxu2 %v1259_v31  ;;  %v1173_v22 = vor.u32 %v1302_v17, %v1170_v18  ;;  %v1336_v31 = vld [vmem:[#allocation10] ss:$0 sm:$0xff]  ;;  %v1310_v12 = vld [vmem:[#allocation14 + $0x164] sm:$0xf] }
  0x44   :  { %228 = vmatmul.bf16.vlgmr.msra.gmra.mxu0 %v151_v15  ;;  %v1201_v15 = vor.u32 %v1309_v5, %v1198_v9  ;;  %v1029_v5 = vor.u32 %v1270_v57, %v1028_v53  ;;  %v1241_v9 = vor.u32 %v1321_v1, %v1240_v62  ;;  %v1209_v18 = vor.u32 %v1310_v12, %v1206_v13  ;;  %v1092_v53 = vld [vmem:[#allocation14 + $0x80] sm:$0xf]  ;;  %v1286_v59 = vld [vmem:[#allocation14 + $0xa0] sm:$0xf0]  ;;  %v1064_v62 = vld [vmem:[#allocation14 + $0x48] sm:$0xf] }
  0x45   :  { %788 = vmatpush.bf16.msrb.mxu0 %v1221_v40  ;;  %v1114_v40 = vld [vmem:[#allocation14 + $0xcc] sm:$0xf0]  ;;  %v1094_v57 = vld [vmem:[#allocation14 + $0x9c] sm:$0xf0]  ;;  %v1066_v1 = vld [vmem:[#allocation14 + $0x64] sm:$0xf0] }
  0x46   :  { %801 = vmatpush.bf16.msrb.mxu1 %v1225_v41  ;;  %v1050_v41 = vld [vmem:[#allocation14 + $0x54] sm:$0xf0]  ;;  %v1272_v12 = vld [vmem:[#allocation14 + $0x30] sm:$0xf0] }
  0x47   :  { %397 = vmatpush.bf16.msra.mxu2 %v1258_v32  ;;  %v1077_v32 = vor.u32 %v1283_v21, %v1076_v20  ;;  %v1053_v51 = vor.u32 %v1273_v38, %v1050_v41  ;;  %v1274_v20 = vld [vmem:[#allocation14 + $0x44] sm:$0xf]  ;;  %v1058_v21 = vld [vmem:[#allocation14 + $0x5c] sm:$0xf0]  ;;  %v1150_v38 = vld [vmem:[#allocation14 + $0x10c] sm:$0xf0] }
  0x48   :  { %v1156_v41 = vld [vmem:[#allocation14 + $0xf8] sm:$0xf] }
  0x49   :  { %789 = vmatpush.bf16.msrb.mxu0 %v1193_v49  ;;  %780 = vmatpush.bf16.msra.mxu3 %v1077_v32  ;;  %v1117_v49 = vor.u32 %v1288_v39, %v1114_v40  ;;  %v1267_v32 = vld [vmem:[#allocation14 + $0xc] sm:$0xf]  ;;  %v1157_v43 = vor.u32 %v1300_v42, %v1156_v41 }
  0x4a   :  { %802 = vmatpush.bf16.msrb.mxu1 %v1197_v50 }
  0x4b   :  { %814 = vmatpush.bf16.msrb.mxu2 %v1229_v4 }
  0x4d   :  { %790 = vmatpush.bf16.msrb.mxu0 %v1165_v60  ;;  %v1317_v60 = vld [vmem:[#allocation14 + $0x19c] sm:$0xf]  ;;  %781 = vmatpush.bf16.msra.mxu3 %v1049_v45  ;;  %v1292_v45 = vld [vmem:[#allocation14 + $0xd0] sm:$0xf0] }
  0x4e   :  { %803 = vmatpush.bf16.msrb.mxu1 %v1169_v61  ;;  %v1234_v61 = vld [vmem:[#allocation14 + $0x1b4] sm:$0xf0]  ;;  %v1121_v47 = vor.u32 %v1292_v45, %v1120_v44 }
  0x4f   :  { %815 = vmatpush.bf16.msrb.mxu2 %v1201_v15  ;;  %v1237_v8 = vor.u32 %v1317_v60, %v1234_v61  ;;  %v1314_v15 = vld [vmem:[#allocation14 + $0x180] sm:$0xf0]  ;;  %v1097_v60 = vor.u32 %v1282_v55, %v1094_v57  ;;  %v1101_v61 = vor.u32 %v1286_v59, %v1100_v58 }
  0x51   :  { %791 = vmatpush.bf16.msrb.mxu0 %v1137_v10  ;;  %v1204_v10 = vld [vmem:[#allocation14 + $0x160] sm:$0xf]  ;;  %782 = vmatpush.bf16.msra.mxu3 %v1021_v0  ;;  %v1275_v0 = vld [vmem:[#allocation14 + $0x4c] sm:$0xf] }
  0x52   :  { %804 = vmatpush.bf16.msrb.mxu1 %v1141_v11  ;;  %v1313_v11 = vld [vmem:[#allocation14 + $0x178] sm:$0xf0] }
  0x53   :  { %816 = vmatpush.bf16.msrb.mxu2 %v1173_v22  ;;  %v1205_v17 = vor.u32 %v1313_v11, %v1204_v10  ;;  %v1176_v22 = vld [vmem:[#allocation14 + $0x128] sm:$0xf]  ;;  %v1038_v10 = vld [vmem:[#allocation14 + $0x2c] sm:$0xf0]  ;;  %v1044_v11 = vld [vmem:[#allocation14 + $0x18] sm:$0xf] }
  0x55   :  { %792 = vmatpush.bf16.msrb.mxu0 %v1109_v23  ;;  %827 = vmatpush.bf16.msrb.mxu3 %v1233_v6  ;;  %v1061_v23 = vor.u32 %v1274_v20, %v1058_v21 }
  0x59   :  { %828 = vmatpush.bf16.msrb.mxu3 %v1205_v17 }
  0xc1   :  { %v229_v25 = vpop.f32.mrf.mxu0 }
  0xc2   :  { %v230_v26 = vadd.f32 %v1335_v24, %v229_v25  ;;  %v1113_v24 = vor.u32 %v1291_v16, %v1112_v14  ;;  %v1280_v25 = vld [vmem:[#allocation14 + $0x74] sm:$0xf]  ;;  %v1212_v14 = vld [vmem:[#allocation14 + $0x168] sm:$0xf] }
  0xc3   :  { %v1213_v19 = vor.u32 %v1314_v15, %v1212_v14  ;;  %v1045_v15 = vor.u32 %v1272_v12, %v1044_v11 }
  0xc4   :  { %v234_v27 = vmul.f32 0.2, %v230_v26  ;;  %vm233_vm0 = vcmp.gt.f32.partialorder %v230_v26, 0.0  ;;  %805 = vmatpush.bf16.msrb.mxu1 %v1113_v24  ;;  %v1306_v24 = vld [vmem:[#allocation14 + $0x140] sm:$0xf0] }
  0xc6   :  { %v235_v28 = vsel %vm233_vm0, %v230_v26, %v234_v27  ;;  %v1295_v26 = vld [vmem:[#allocation14 + $0xec] sm:$0xf]  ;;  %v1142_v27 = vld [vmem:[#allocation14 + $0x104] sm:$0xf0] }
  0xc7   :  { %v236_v29 = vpack.c.bf16 %v235_v28, %v235_v28  ;;  %v1078_v28 = vld [vmem:[#allocation14 + $0x8c] sm:$0xf0]  ;;  %v1145_v35 = vor.u32 %v1295_v26, %v1142_v27  ;;  %v1178_v26 = vld [vmem:[#allocation14 + $0x144] sm:$0xf0]  ;;  %v1177_v27 = vor.u32 %v1306_v24, %v1176_v22 }
  0xc8   :  { %v1081_v36 = vor.u32 %v1280_v25, %v1078_v28  ;;  %v1303_v25 = vld [vmem:[#allocation14 + $0x12c] sm:$0xf] }
  0xc9   :  { %v231_v30 = vpop.f32.mrf.mxu0  ;;  %313 = vmatmul.bf16.vlgmr.msra.gmra.mxu1 %v236_v29  ;;  %v1084_v29 = vld [vmem:[#allocation14 + $0x78] sm:$0xf]  ;;  %817 = vmatpush.bf16.msrb.mxu2 %v1145_v35  ;;  %v1181_v28 = vor.u32 %v1303_v25, %v1178_v26  ;;  %v1033_v35 = vor.u32 %v1267_v32, %v1030_v33 }
  0xca   :  { %v1284_v30 = vld [vmem:[#allocation14 + $0x90] sm:$0xf0]  ;;  %793 = vmatpush.bf16.msrb.mxu0 %v1081_v36  ;;  %829 = vmatpush.bf16.msrb.mxu3 %v1177_v27  ;;  %v1299_v36 = vld [vmem:[#allocation14 + $0x108] sm:$0xf0] }
  0xcb   :  { %v1085_v37 = vor.u32 %v1284_v30, %v1084_v29  ;;  %v1184_v29 = vld [vmem:[#allocation14 + $0x130] sm:$0xf]  ;;  %v1307_v30 = vld [vmem:[#allocation14 + $0x148] sm:$0xf0]  ;;  %v1149_v39 = vor.u32 %v1299_v36, %v1148_v34 }
  0xcd   :  { %806 = vmatpush.bf16.msrb.mxu1 %v1085_v37  ;;  %818 = vmatpush.bf16.msrb.mxu2 %v1117_v49  ;;  %v1296_v37 = vld [vmem:[#allocation14 + $0xf4] sm:$0xf]  ;;  %v1128_v49 = vld [vmem:[#allocation14 + $0xc0] sm:$0xf] }
  0xce   :  { %794 = vmatpush.bf16.msrb.mxu0 %v1053_v51  ;;  %v1153_v40 = vor.u32 %v1296_v37, %v1150_v38  ;;  %830 = vmatpush.bf16.msrb.mxu3 %v1149_v39  ;;  %v1125_v51 = vor.u32 %v1289_v46, %v1122_v48 }
  0xd1   :  { %807 = vmatpush.bf16.msrb.mxu1 %v1057_v52  ;;  %819 = vmatpush.bf16.msrb.mxu2 %v1089_v2  ;;  %v1072_v2 = vld [vmem:[#allocation14 + $0x50] sm:$0xf] }
  0xd2   :  { %795 = vmatpush.bf16.msrb.mxu0 %v1025_v3  ;;  %831 = vmatpush.bf16.msrb.mxu3 %v1121_v47  ;;  %v1279_v3 = vld [vmem:[#allocation14 + $0x68] sm:$0xf0] }
  0xd3   :  { %v1073_v6 = vor.u32 %v1279_v3, %v1072_v2 }
  0xd5   :  { %808 = vmatpush.bf16.msrb.mxu1 %v1029_v5  ;;  %820 = vmatpush.bf16.msrb.mxu2 %v1061_v23  ;;  %v1069_v5 = vor.u32 %v1275_v0, %v1066_v1  ;;  %v471_v23 = vld [vmem:[%s1681_s8] sm:$0xff]  ;;  %s1592_s8 = smov [#allocation16]  }
  0xd6   :  { %840 = vmatpush.bf16.msra.mxu0 %v1237_v8  ;;  %v1271_v8 = vld [vmem:[#allocation14 + $0x28] sm:$0xf0]  ;;  %v474_v24 = vperm.slane %v471_v23, 1  ;;  %v475_v25 = vperm.slane %v471_v23, 2  ;;  %v476_v33 = vperm.slane %v471_v23, 3  ;;  %v478_v48 = vperm.slane %v471_v23, 5 }
  0xd7   :  { %v477_v59 = vperm.slane %v471_v23, 4  ;;  %s906_s25 = sshll.u32 %s1592_s8, 4  ;;  %s907_s25 = int_to_ptr.vmem [resolvable:$true] %s906_s25 }
  0xd9   :  { %853 = vmatpush.bf16.msra.mxu1 %v1241_v9  ;;  %821 = vmatpush.bf16.msrb.mxu2 %v1033_v35  ;;  %v1268_v9 = vld [vmem:[#allocation14 + $0x14] sm:$0xf] }
  0xda   :  { %841 = vmatpush.bf16.msra.mxu0 %v1209_v18  ;;  %v1041_v14 = vor.u32 %v1268_v9, %v1038_v10 }
  0xdd   :  { %854 = vmatpush.bf16.msra.mxu1 %v1213_v19 }
  0xde   :  { %842 = vmatpush.bf16.msra.mxu0 %v1181_v28 }
  0xe2   :  { %843 = vmatpush.bf16.msra.mxu0 %v1153_v40 }
  0xe6   :  { %844 = vmatpush.bf16.msra.mxu0 %v1125_v51 }
  0xea   :  { %845 = vmatpush.bf16.msra.mxu0 %v1097_v60 }
  0xee   :  { %846 = vmatpush.bf16.msra.mxu0 %v1069_v5 }
  0xf2   :  { %847 = vmatpush.bf16.msra.mxu0 %v1041_v14 }
 0x146   :  { %v314_v50 = vpop.f32.mrf.mxu1 }
 0x147   :  { %v315_v56 = vadd.f32 %v1336_v31, %v314_v50  ;;  %v1185_v31 = vor.u32 %v1307_v30, %v1184_v29  ;;  %v1293_v50 = vld [vmem:[#allocation14 + $0xd8] sm:$0xf0] }
 0x148   :  { %v1129_v52 = vor.u32 %v1293_v50, %v1128_v49  ;;  %v479_v50 = vperm.slane %v471_v23, 6 }
 0x149   :  { %v319_v63 = vmul.f32 0.2, %v315_v56  ;;  %vm318_vm1 = vcmp.gt.f32.partialorder %v315_v56, 0.0  ;;  %855 = vmatpush.bf16.msra.mxu1 %v1185_v31  ;;  %v473_v31 = vperm.slane %v471_v23, 0 }
 0x14b   :  { %v320_v4 = vsel %vm318_vm1, %v315_v56, %v319_v63  ;;  %v1093_v56 = vor.u32 %v1285_v54, %v1092_v53  ;;  %v1278_v63 = vld [vmem:[#allocation14 + $0x60] sm:$0xf0] }
 0x14c   :  { %v321_v7 = vpack.c.bf16 %v320_v4, %v320_v4  ;;  %v1065_v4 = vor.u32 %v1278_v63, %v1064_v62 }
 0x14d   :  { %856 = vmatpush.bf16.msra.mxu1 %v1157_v43  ;;  %832 = vmatpush.bf16.msrb.mxu3 %v1093_v56 }
 0x14e   :  { %v316_v16 = vpop.f32.mrf.mxu1  ;;  %398 = vmatmul.bf16.vlgmr.msra.gmra.mxu2 %v321_v7  ;;  %v1036_v7 = vld [vmem:[#allocation14 + $0x10] sm:$0xf] }
 0x14f   :  { %v1037_v13 = vor.u32 %v1271_v8, %v1036_v7  ;;  %v1337_v16 = vld [vmem:[#allocation13] ss:$0 sm:$0xff] }
 0x151   :  { %857 = vmatpush.bf16.msra.mxu1 %v1129_v52  ;;  %833 = vmatpush.bf16.msrb.mxu3 %v1065_v4 }
 0x155   :  { %858 = vmatpush.bf16.msra.mxu1 %v1101_v61  ;;  %834 = vmatpush.bf16.msrb.mxu3 %v1037_v13 }
 0x159   :  { %859 = vmatpush.bf16.msra.mxu1 %v1073_v6 }
 0x15d   :  { %860 = vmatpush.bf16.msra.mxu1 %v1045_v15 }
 0x1d1   :  { %v399_v17 = vpop.f32.mrf.mxu2 }
 0x1d2   :  { %v400_v18 = vadd.f32 %v1337_v16, %v399_v17 }
 0x1d4   :  { %vm403_vm2 = vcmp.gt.f32.partialorder %v400_v18, 0.0  ;;  %v404_v19 = vmul.f32 0.2, %v400_v18 }
 0x1d6   :  { %v405_v20 = vsel %vm403_vm2, %v400_v18, %v404_v19 }
 0x1d7   :  { %v406_v21 = vpack.c.bf16 %v405_v20, %v405_v20 }
 0x1d9   :  { %v401_v22 = vpop.f32.mrf.mxu2  ;;  %783 = vmatmul.bf16.vlgmr.msra.gmra.mxu3 %v406_v21  ;;  %796 = vmatmul.bf16.vlgmr.msrb.gmra.mxu0 %v406_v21 }
 0x1da   :  { %809 = vmatmul.bf16.vlgmr.msrb.gmra.mxu1 %v406_v21  ;;  %822 = vmatmul.bf16.vlgmr.msrb.gmra.mxu2 %v406_v21 }
 0x1e9   :  { %835 = vmatmul.bf16.vlgmr.msrb.gmra.mxu3 %v406_v21  ;;  %848 = vmatmul.bf16.vlgmr.msra.gmra.mxu0 %v406_v21 }
 0x1ea   :  { %861 = vmatmul.bf16.vlgmr.msra.gmra.mxu1 %v406_v21 }
 0x256   :  { %v797_v26 = vpop.f32.mrf.mxu0 }
 0x257   :  { %v798_v27 = vadd.f32 %v797_v26, %v474_v24  ;;  %v810_v28 = vpop.f32.mrf.mxu1 }
 0x258   :  { %v811_v29 = vadd.f32 %v810_v28, %v475_v25 }
 0x259   :  { %vm867_vm3 = vcmp.gt.f32.partialorder %v798_v27, 0.0  ;;  %v874_v30 = vmul.f32 0.2, %v798_v27 }
 0x25a   :  { %vm868_vm4 = vcmp.gt.f32.partialorder %v811_v29, 0.0  ;;  %v875_v32 = vmul.f32 0.2, %v811_v29 }
 0x25b   :  { %v881_v34 = vsel %vm867_vm3, %v798_v27, %v874_v30 }
 0x25c   :  { %1338 = vtanh.f32 %v881_v34  ;;  %v882_v35 = vsel %vm868_vm4, %v811_v29, %v875_v32  ;;  %v784_v36 = vpop.f32.mrf.mxu3 }
 0x25d   :  { %1340 = vtanh.f32 %v882_v35  ;;  %v785_v37 = vadd.f32 %v784_v36, %v473_v31  ;;  %v823_v38 = vpop.f32.mrf.mxu2 }
 0x25e   :  { %v824_v39 = vadd.f32 %v823_v38, %v476_v33  ;;  %v799_v40 = vpop.f32.mrf.mxu0 }
 0x25f   :  { %vm866_vm5 = vcmp.gt.f32.partialorder %v785_v37, 0.0  ;;  %v873_v41 = vmul.f32 0.2, %v785_v37  ;;  %v812_v42 = vpop.f32.mrf.mxu1 }
 0x260   :  { %vm869_vm6 = vcmp.gt.f32.partialorder %v824_v39, 0.0  ;;  %v876_v43 = vmul.f32 0.2, %v824_v39 }
 0x261   :  { %v880_v44 = vsel %vm866_vm5, %v785_v37, %v873_v41 }
 0x262   :  { %v1339_v45 = vpop.eup %1338  ;;  %1342 = vtanh.f32 %v880_v44  ;;  %v883_v46 = vsel %vm869_vm6, %v824_v39, %v876_v43 }
 0x263   :  { %v1341_v47 = vpop.eup %1340  ;;  %895 = vst [vmem:[#allocation16 + $0x8] sm:$0xff] %v1339_v45  ;;  %1344 = vtanh.f32 %v883_v46 }
 0x264   :  { %896 = vst [vmem:[#allocation16 + $0x10] sm:$0xff] %v1341_v47  ;;  %v786_v49 = vpop.f32.mrf.mxu3 }
 0x265   :  { %v825_v51 = vpop.f32.mrf.mxu2 }
 0x266   :  { %v849_v52 = vpop.f32.mrf.mxu0 }
 0x267   :  { %v850_v53 = vadd.f32 %v849_v52, %v478_v48  ;;  %v862_v54 = vpop.f32.mrf.mxu1 }
 0x268   :  { %v1343_v55 = vpop.eup %1342  ;;  %v863_v56 = vadd.f32 %v862_v54, %v479_v50 }
 0x269   :  { %v1345_v57 = vpop.eup %1344  ;;  %894 = vst [vmem:[#allocation16] sm:$0xff] %v1343_v55  ;;  %vm871_vm7 = vcmp.gt.f32.partialorder %v850_v53, 0.0  ;;  %v878_v58 = vmul.f32 0.2, %v850_v53 }
 0x26a   :  { %897 = vst [vmem:[#allocation16 + $0x18] sm:$0xff] %v1345_v57  ;;  %vm872_vm8 = vcmp.gt.f32.partialorder %v863_v56, 0.0  ;;  %v879_v60 = vmul.f32 0.2, %v863_v56 }
 0x26b   :  { %v885_v61 = vsel %vm871_vm7, %v850_v53, %v878_v58 }
 0x26c   :  { %1346 = vtanh.f32 %v885_v61  ;;  %v886_v62 = vsel %vm872_vm8, %v863_v56, %v879_v60  ;;  %v836_v63 = vpop.f32.mrf.mxu3 }
 0x26d   :  { %1348 = vtanh.f32 %v886_v62  ;;  %v837_v0 = vadd.f32 %v836_v63, %v477_v59 }
 0x26e   :  { %v851_v1 = vpop.f32.mrf.mxu0 }
 0x26f   :  { %vm870_vm9 = vcmp.gt.f32.partialorder %v837_v0, 0.0  ;;  %v877_v2 = vmul.f32 0.2, %v837_v0  ;;  %v864_v3 = vpop.f32.mrf.mxu1 }
 0x271   :  { %v884_v4 = vsel %vm870_vm9, %v837_v0, %v877_v2 }
 0x272   :  { %v1347_v5 = vpop.eup %1346  ;;  %1350 = vtanh.f32 %v884_v4 }
 0x273   :  { %v1349_v6 = vpop.eup %1348  ;;  %899 = vst [vmem:[#allocation16 + $0x28] sm:$0xff] %v1347_v5 }
 0x274   :  { %900 = vst [vmem:[#allocation16 + $0x30] sm:$0xff] %v1349_v6  ;;  %v838_v7 = vpop.f32.mrf.mxu3 }
 0x278   :  { %v1351_v8 = vpop.eup %1350 }
 0x279   :  { %898 = vst [vmem:[#allocation16 + $0x20] sm:$0xff] %v1351_v8 }
 0x27a   :  { %911 = dma.vmem_to_hbm [thread:$0]  %s907_s25, 896, %s909_s3, [#allocation4]  }
 0x27b   :  { %1578 = dma.done.wait [#allocation4], 896  }
 0x27c   :  { %1579 = vsyncadd [#allocation4], 4294966400 }
 0x27d   :  { %916 = vsyncpa [#allocation3], 1 }
 0x27e   :  { %917 = vsyncpa [#allocation6], 1 }
 0x27f   :  { %918 = vsyncpa [#allocation9], 1 }
 0x280   :  { %919 = vsyncpa [#allocation12], 1 }
 0x281   :  { %920 = vsyncpa [#allocation15], 1 }
 0x282   :  { %921 = vsyncpa [#allocation4], 1 }

</bundles_post_ra>
